<compile_context>
chip_gen: v7x
topology: tpu7x:2x2x1
jax: 0.10.0
libtpu: 0.0.40
codegen_flags: <defaults>
</compile_context>

<pallas_src>
import jax
import jax.numpy as jnp
from jax import lax
from jax.experimental import pallas as pl
from jax.experimental.pallas import tpu as pltpu

IN_DIM = 28
HID_DIM = 256
OUT_DIM = 3
LANE = 128
DEFAULT_TB_MAX = 4096  # max batch-tile size (lanes); VMEM-safe on v5e/v6e/v7x


def _round_up(n, m):
    return ((n + m - 1) // m) * m


def _choose_tiling(batch, tb_max=DEFAULT_TB_MAX):
    """Balanced tiles: pick tile count first, then round tile size to a lane
    multiple, so padding waste is bounded by <128 rows (not up to TB-1)."""
    n_tiles = pl.cdiv(batch, tb_max)
    if batch > LANE:
        # Enough work for >=2 tiles -> let both v7x TensorCores participate.
        n_tiles = max(n_tiles, 2)
    tb = _round_up(pl.cdiv(batch, n_tiles), LANE)
    n_tiles = pl.cdiv(batch, tb)        # rounding tb up may reduce tile count
    b_pad = n_tiles * tb
    return tb, n_tiles, b_pad


def xnet_kernel(x_ref, w1_ref, b1_ref, w2_ref, b2_ref, ot_ref):
    # x_ref: [TB, 28] bf16 (native PyTorch layout tile), w1_ref: [256, 28] bf16.
    # Contract the 28-dim of both (rhs-transposed dot, handled in VMEM/MXU feed;
    # no host transpose needed) -> h^T with the batch tile on the lane axis.
    h = lax.dot_general(
        w1_ref[...], x_ref[...],
        dimension_numbers=(((1,), (1,)), ((), ())),
        preferred_element_type=jnp.float32)                    # [256, TB] f32
    h = jnp.maximum(h + b1_ref[...], 0.0)                      # bias + ReLU (f32)
    y = jnp.dot(w2_ref[...], h.astype(jnp.bfloat16),
                preferred_element_type=jnp.float32)            # [3, TB] f32
    ot_ref[...] = jnp.maximum(y + b2_ref[...], 0.0)            # bias + ReLU (f32)


def xnet_forward(x, w1, b1, w2, b2, *, tb_max=DEFAULT_TB_MAX):
    """x: [B, 28] f32 (native PyTorch Linear input layout).
    Weights in PyTorch layout: w1 [256, 28], b1 [256], w2 [3, 256], b2 [3].
    Returns [B, 3] f32."""
    B = x.shape[0]
    tb, n_tiles, b_pad = _choose_tiling(B, tb_max)

    # Cheap batch-only pad (no transpose round trip); no-op when B % tb == 0.
    if b_pad != B:
        x = jnp.pad(x, ((0, b_pad - B), (0, 0)))

    # bf16 MXU operands; biases stay f32 (elementwise path stays f32).
    x_bf = x.astype(jnp.bfloat16)
    w1_bf = w1.astype(jnp.bfloat16)
    w2_bf = w2.astype(jnp.bfloat16)
    b1c = b1.reshape(HID_DIM, 1).astype(jnp.float32)   # broadcasts over lanes
    b2c = b2.reshape(OUT_DIM, 1).astype(jnp.float32)

    cost = pl.CostEstimate(
        flops=2 * b_pad * (IN_DIM * HID_DIM + HID_DIM * OUT_DIM),
        transcendentals=0,
        bytes_accessed=(
            2 * (b_pad * IN_DIM + HID_DIM * IN_DIM + OUT_DIM * HID_DIM)  # bf16
            + 4 * (HID_DIM + OUT_DIM + b_pad * OUT_DIM)                  # f32
        ),
    )

    out_t = pl.pallas_call(
        xnet_kernel,
        out_shape=jax.ShapeDtypeStruct((OUT_DIM, b_pad), jnp.float32),
        grid_spec=pltpu.PrefetchScalarGridSpec(
            num_scalar_prefetch=0,
            grid=(n_tiles,),
            in_specs=[
                pl.BlockSpec((tb, IN_DIM), lambda i: (i, 0)),        # x tile (pipelined)
                pl.BlockSpec((HID_DIM, IN_DIM), lambda i: (0, 0)),   # W1, VMEM-resident
                pl.BlockSpec((HID_DIM, 1), lambda i: (0, 0)),        # b1, resident
                pl.BlockSpec((OUT_DIM, HID_DIM), lambda i: (0, 0)),  # W2, resident
                pl.BlockSpec((OUT_DIM, 1), lambda i: (0, 0)),        # b2, resident
            ],
            # Lane-dense transposed output tile: batch on the lane axis.
            out_specs=pl.BlockSpec((OUT_DIM, tb), lambda i: (0, i)),
        ),
        compiler_params=pltpu.CompilerParams(
            dimension_semantics=("parallel",),  # shard batch tiles across TCs (v7x)
        ),
        cost_estimate=cost,
    )(x_bf, w1_bf, b1c, w2_bf, b2c)

    # Padded columns hold ReLU(bias) garbage; slice them away, then back to [B, 3].
    return out_t[:, :B].T


def init_params(key):
    # Mimics nn.Linear's uniform(-1/sqrt(fan_in), 1/sqrt(fan_in)); PyTorch layout.
    k1, k2, k3, k4 = jax.random.split(key, 4)
    bound1 = 1.0 / jnp.sqrt(IN_DIM)
    bound2 = 1.0 / jnp.sqrt(HID_DIM)
    w1 = jax.random.uniform(k1, (HID_DIM, IN_DIM), jnp.float32, -bound1, bound1)
    b1 = jax.random.uniform(k2, (HID_DIM,), jnp.float32, -bound1, bound1)
    w2 = jax.random.uniform(k3, (OUT_DIM, HID_DIM), jnp.float32, -bound2, bound2)
    b2 = jax.random.uniform(k4, (OUT_DIM,), jnp.float32, -bound2, bound2)
    return w1, b1, w2, b2


def reference_forward(x, w1, b1, w2, b2):
    # Pure-f32 reference of the PyTorch forward.
    h = jnp.maximum(x @ w1.T + b1, 0.0)
    return jnp.maximum(h @ w2.T + b2, 0.0)


if __name__ == "__main__":
    key = jax.random.PRNGKey(0)
    kx, kp = jax.random.split(key)

    B = 8
    x = jax.random.normal(kx, (B, IN_DIM), jnp.float32)
    w1, b1, w2, b2 = init_params(kp)

    out = jax.block_until_ready(xnet_forward(x, w1, b1, w2, b2))
    ref = reference_forward(x, w1, b1, w2, b2)

    assert out.shape == (B, OUT_DIM)
    # bf16 MXU operands -> ~1e-2-level agreement with the f32 reference.
    assert jnp.allclose(out, ref, atol=2e-2, rtol=2e-2), (
        f"max abs err {jnp.max(jnp.abs(out - ref))}")

    # Note: at B=8 the call is launch/step-overhead dominated; benchmark at
    # B >= a few thousand with an xprof trace (min-of-N), not perf_counter.
    print("KERNEL_OK")
</pallas_src>

<mosaic_0001>
module attributes {stable_mosaic.version = 11 : i64} {
  func.func @xnet_kernel(%arg0: i32, %arg1: memref<128x28xbf16, #tpu.memory_space<vmem>>, %arg2: memref<256x28xbf16, #tpu.memory_space<vmem>>, %arg3: memref<256x1xf32, #tpu.memory_space<vmem>>, %arg4: memref<3x256xbf16, #tpu.memory_space<vmem>>, %arg5: memref<3x1xf32, #tpu.memory_space<vmem>>, %arg6: memref<3x128xf32, #tpu.memory_space<vmem>>) attributes {dimension_semantics = [#tpu.dimension_semantics<parallel>], iteration_bounds = array<i64: 1>, scalar_prefetch = 0 : i64, scratch_operands = 0 : i64, tpu.core_type = #tpu.core_type<tc>, window_params = [{transform_indices = @transform_0, window_bounds = array<i64: 128, 28>}, {pipeline_mode = #tpu.pipeline_mode<synchronous>, transform_indices = @transform_1, window_bounds = array<i64: 256, 28>}, {pipeline_mode = #tpu.pipeline_mode<synchronous>, transform_indices = @transform_2, window_bounds = array<i64: 256, 1>}, {pipeline_mode = #tpu.pipeline_mode<synchronous>, transform_indices = @transform_3, window_bounds = array<i64: 3, 256>}, {pipeline_mode = #tpu.pipeline_mode<synchronous>, transform_indices = @transform_4, window_bounds = array<i64: 3, 1>}, {transform_indices = @transform_5, window_bounds = array<i64: 3, 128>}]} {
    %c0 = arith.constant 0 : index
    %c0_0 = arith.constant 0 : index
    %0 = vector.load %arg2[%c0, %c0_0] : memref<256x28xbf16, #tpu.memory_space<vmem>>, vector<256x28xbf16>
    %c0_1 = arith.constant 0 : index
    %c0_2 = arith.constant 0 : index
    %1 = vector.load %arg1[%c0_1, %c0_2] : memref<128x28xbf16, #tpu.memory_space<vmem>>, vector<128x28xbf16>
    %cst = arith.constant dense<0.000000e+00> : vector<256x128xf32>
    %2 = tpu.matmul %0, %1, %cst {dimension_numbers = #tpu.dot_dimension_numbers<[1], [1], [0], [0], [0, 0, 1, 0], [], []>} : vector<256x28xbf16>, vector<128x28xbf16>, vector<256x128xf32> -> vector<256x128xf32>
    %c0_3 = arith.constant 0 : index
    %c0_4 = arith.constant 0 : index
    %3 = vector.load %arg3[%c0_3, %c0_4] : memref<256x1xf32, #tpu.memory_space<vmem>>, vector<256x1xf32>
    %4 = vector.broadcast %3 : vector<256x1xf32> to vector<256x128xf32>
    %5 = arith.addf %2, %4 : vector<256x128xf32>
    %cst_5 = arith.constant 0.000000e+00 : f32
    %6 = vector.broadcast %cst_5 : f32 to vector<256x128xf32>
    %7 = arith.maximumf %5, %6 : vector<256x128xf32>
    %c0_6 = arith.constant 0 : index
    %c0_7 = arith.constant 0 : index
    %8 = vector.load %arg4[%c0_6, %c0_7] : memref<3x256xbf16, #tpu.memory_space<vmem>>, vector<3x256xbf16>
    %9 = arith.truncf %7 : vector<256x128xf32> to vector<256x128xbf16>
    %cst_8 = arith.constant dense<0.000000e+00> : vector<3x128xf32>
    %10 = tpu.matmul %8, %9, %cst_8 {dimension_numbers = #tpu.dot_dimension_numbers<[1], [0], [0], [1], [0, 0, 1, 1], [], []>} : vector<3x256xbf16>, vector<256x128xbf16>, vector<3x128xf32> -> vector<3x128xf32>
    %c0_9 = arith.constant 0 : index
    %c0_10 = arith.constant 0 : index
    %11 = vector.load %arg5[%c0_9, %c0_10] : memref<3x1xf32, #tpu.memory_space<vmem>>, vector<3x1xf32>
    %12 = vector.broadcast %11 : vector<3x1xf32> to vector<3x128xf32>
    %13 = arith.addf %10, %12 : vector<3x128xf32>
    %cst_11 = arith.constant 0.000000e+00 : f32
    %14 = vector.broadcast %cst_11 : f32 to vector<3x128xf32>
    %15 = arith.maximumf %13, %14 : vector<3x128xf32>
    %c0_12 = arith.constant 0 : index
    %c0_13 = arith.constant 0 : index
    %16 = vector.load %arg6[%c0_12, %c0_13] : memref<3x128xf32, #tpu.memory_space<vmem>>, vector<3x128xf32>
    tpu.vector_store %arg6[%c0_12, %c0_13], %15 {strides = array<i32>} : memref<3x128xf32, #tpu.memory_space<vmem>>, vector<3x128xf32>,
    return
  }
  func.func @transform_0(%arg0: i32) -> (i32, i32) {
    %c0_i32 = arith.constant 0 : i32
    %c0_i32_0 = arith.constant 0 : i32
    return %arg0, %c0_i32 : i32, i32
  }
  func.func @transform_1(%arg0: i32) -> (i32, i32) {
    %c0_i32 = arith.constant 0 : i32
    %c0_i32_0 = arith.constant 0 : i32
    %c0_i32_1 = arith.constant 0 : i32
    return %c0_i32, %c0_i32_0 : i32, i32
  }
  func.func @transform_2(%arg0: i32) -> (i32, i32) {
    %c0_i32 = arith.constant 0 : i32
    %c0_i32_0 = arith.constant 0 : i32
    %c0_i32_1 = arith.constant 0 : i32
    return %c0_i32, %c0_i32_0 : i32, i32
  }
  func.func @transform_3(%arg0: i32) -> (i32, i32) {
    %c0_i32 = arith.constant 0 : i32
    %c0_i32_0 = arith.constant 0 : i32
    %c0_i32_1 = arith.constant 0 : i32
    return %c0_i32, %c0_i32_0 : i32, i32
  }
  func.func @transform_4(%arg0: i32) -> (i32, i32) {
    %c0_i32 = arith.constant 0 : i32
    %c0_i32_0 = arith.constant 0 : i32
    %c0_i32_1 = arith.constant 0 : i32
    return %c0_i32, %c0_i32_0 : i32, i32
  }
  func.func @transform_5(%arg0: i32) -> (i32, i32) {
    %c0_i32 = arith.constant 0 : i32
    %c0_i32_0 = arith.constant 0 : i32
    return %c0_i32, %arg0 : i32, i32
  }
}

</mosaic_0001>

<bundles_post_ra>
// kernel: tpu_custom_call.1
= control target key start
LH: loop header
LB: loop body
LE: loop exit
PB: predicated region body
PF: predicated region fallthrough
CT: control target
= control target key end

     0   :  { %vm382_vm0 = vcmask 228352   ;;  %v933_v3 = vmov 0   ;;  %s1260_s0 = inlined_call_operand.vmem [shape: bf16[128,28], index: 0, kind: input, shape index: {}]   ;;  %s1261_s1 = inlined_call_operand.vmem [shape: bf16[256,28], index: 1, kind: input, shape index: {}]   ;;  %s1262_s2 = inlined_call_operand.vmem [shape: f32[256,1], index: 2, kind: input, shape index: {}]   ;;  %s1263_s3 = inlined_call_operand.vmem [shape: bf16[3,256], index: 3, kind: input, shape index: {}]   ;;  %s1264_s4 = inlined_call_operand.vmem [shape: f32[3,1], index: 4, kind: input, shape index: {}]   ;;  %s1265_s5 = inlined_call_operand.hbm [shape: f32[3,128], index: 5, kind: output, shape index: {}]  }
   0x1   :  { %v885_v0 = vld [vmem:[%s1260_s0] sm:$0xff]   ;;  %v886_v1 = vld [vmem:[%s1260_s0 + $0x8] sm:$0xff]   ;;  %883 = vset.pattern.permute.xlu0 %v933_v3  ;;  %884 = vset.pattern.permute.xlu1 %v933_v3  ;;  %v887_v4 = vld [vmem:[%s1260_s0 + $0x10] sm:$0xff]  }
   0x2   :  { %873 = vmatprep.subr.msk.bf16.mxu0 %vm382_vm0, %v885_v0  ;;  %v432_v2 = vsel %vm382_vm0, %v885_v0, 0  ;;  %v435_v5 = vsel %vm382_vm0, %v886_v1, 0  ;;  %v893_v6 = vld [vmem:[%s1261_s1] sm:$0xff]   ;;  %v438_v8 = vsel %vm382_vm0, %v887_v4, 0  ;;  %v888_v9 = vld [vmem:[%s1260_s0 + $0x18] sm:$0xff]   ;;  %v87_v11 = vld [vmem:[%s1262_s2 + $0x88] sm:$0xff] }
   0x3   :  { %826 = vmatpush3.bf16.xpose.msra.mxu0 %v432_v2  ;;  %841 = vmatprep.mubr.msk.bf16.mxu0 %vm382_vm0, %v893_v6  ;;  %v86_v7 = vld [vmem:[%s1262_s2 + $0x80] sm:$0xff]  ;;  %v71_v12 = vld [vmem:[%s1262_s2 + $0x8] sm:$0xff]  ;;  %v88_v13 = vld [vmem:[%s1262_s2 + $0x90] sm:$0xff]  ;;  %v441_v15 = vsel %vm382_vm0, %v888_v9, 0 }
   0x4   :  { %874 = vmatprep.subr.msk.bf16.mxu0 %vm382_vm0, %v886_v1  ;;  %184 = vperm.xlu0 %883, %v86_v7   ;;  %v70_v10 = vld [vmem:[%s1262_s2] sm:$0xff]  ;;  %v89_v14 = vld [vmem:[%s1262_s2 + $0x98] sm:$0xff]  ;;  %v72_v17 = vld [vmem:[%s1262_s2 + $0x10] sm:$0xff] }
   0x5   :  { %104 = vperm.xlu1 %884, %v70_v10   ;;  %v889_v16 = vld [vmem:[%s1260_s0 + $0x20] sm:$0xff]   ;;  %v73_v18 = vld [vmem:[%s1262_s2 + $0x18] sm:$0xff]  ;;  %v91_v20 = vld [vmem:[%s1262_s2 + $0xa8] sm:$0xff] }
   0x6   :  { %v90_v19 = vld [vmem:[%s1262_s2 + $0xa0] sm:$0xff]  ;;  %v444_v21 = vsel %vm382_vm0, %v889_v16, 0  ;;  %v890_v22 = vld [vmem:[%s1260_s0 + $0x28] sm:$0xff]  }
   0x7   :  { %v74_v23 = vld [vmem:[%s1262_s2 + $0x20] sm:$0xff]  ;;  %v75_v24 = vld [vmem:[%s1262_s2 + $0x28] sm:$0xff] }
   0x8   :  { %189 = vperm.xlu0 %883, %v87_v11  }
   0x9   :  { %109 = vperm.xlu1 %884, %v71_v12  }
   0xb   :  { %828 = vmatpush3.bf16.xpose.msra.mxu0 %v435_v5 }
   0xc   :  { %875 = vmatprep.subr.msk.bf16.mxu0 %vm382_vm0, %v887_v4  ;;  %194 = vperm.xlu0 %883, %v88_v13  }
   0xd   :  { %199 = vperm.xlu1 %884, %v89_v14  }
  0x10   :  { %114 = vperm.xlu0 %883, %v72_v17  }
  0x11   :  { %119 = vperm.xlu1 %884, %v73_v18  }
  0x13   :  { %830 = vmatpush3.bf16.xpose.msra.mxu0 %v438_v8 }
  0x14   :  { %876 = vmatprep.subr.msk.bf16.mxu0 %vm382_vm0, %v888_v9  ;;  %204 = vperm.xlu0 %883, %v90_v19  }
  0x15   :  { %209 = vperm.xlu1 %884, %v91_v20  }
  0x1b   :  { %832 = vmatpush3.bf16.xpose.msra.mxu0 %v441_v15 }
  0x1c   :  { %877 = vmatprep.subr.msk.bf16.mxu0 %vm382_vm0, %v889_v16 }
  0x23   :  { %834 = vmatpush3.bf16.xpose.msra.mxu0 %v444_v21 }
  0x24   :  { %10 = vsyncpa [#allocation3], 0  ;;  %878 = vmatprep.subr.msk.bf16.mxu0 %vm382_vm0, %v890_v22  ;;  %124 = vperm.xlu0 %883, %v74_v23   ;;  %v92_v25 = vld [vmem:[%s1262_s2 + $0xb0] sm:$0xff]  ;;  %v93_v26 = vld [vmem:[%s1262_s2 + $0xb8] sm:$0xff]  ;;  %v447_v27 = vsel %vm382_vm0, %v890_v22, 0 }
  0x25   :  { %129 = vperm.xlu1 %884, %v75_v24   ;;  %v891_v28 = vld [vmem:[%s1260_s0 + $0x30] sm:$0xff]   ;;  %v77_v30 = vld [vmem:[%s1262_s2 + $0x38] sm:$0xff]  ;;  %v94_v31 = vld [vmem:[%s1262_s2 + $0xc0] sm:$0xff] }
  0x26   :  { %v76_v29 = vld [vmem:[%s1262_s2 + $0x30] sm:$0xff]  ;;  %v95_v32 = vld [vmem:[%s1262_s2 + $0xc8] sm:$0xff]  ;;  %v450_v33 = vsel %vm382_vm0, %v891_v28, 0  ;;  %v892_v34 = vld [vmem:[%s1260_s0 + $0x38] sm:$0xff]  }
  0x27   :  { %v78_v35 = vld [vmem:[%s1262_s2 + $0x40] sm:$0xff]  ;;  %v79_v36 = vld [vmem:[%s1262_s2 + $0x48] sm:$0xff]  ;;  %v96_v37 = vld [vmem:[%s1262_s2 + $0xd0] sm:$0xff]  ;;  %v453_v39 = vsel %vm382_vm0, %v892_v34, 0 }
  0x28   :  { %214 = vperm.xlu0 %883, %v92_v25   ;;  %v97_v38 = vld [vmem:[%s1262_s2 + $0xd8] sm:$0xff]  ;;  %v80_v40 = vld [vmem:[%s1262_s2 + $0x50] sm:$0xff]  ;;  %v98_v42 = vld [vmem:[%s1262_s2 + $0xe0] sm:$0xff] }
  0x29   :  { %219 = vperm.xlu1 %884, %v93_v26   ;;  %v81_v41 = vld [vmem:[%s1262_s2 + $0x58] sm:$0xff]  ;;  %v894_v43 = vld [vmem:[%s1261_s1 + $0x8] sm:$0xff]   ;;  %v895_v45 = vld [vmem:[%s1261_s1 + $0x10] sm:$0xff]  }
  0x2a   :  { %v99_v44 = vld [vmem:[%s1262_s2 + $0xe8] sm:$0xff]  ;;  %v82_v46 = vld [vmem:[%s1262_s2 + $0x60] sm:$0xff]  ;;  %v100_v48 = vld [vmem:[%s1262_s2 + $0xf0] sm:$0xff] }
  0x2b   :  { %836 = vmatpush3.bf16.xpose.msra.mxu0 %v447_v27  ;;  %v83_v47 = vld [vmem:[%s1262_s2 + $0x68] sm:$0xff]  ;;  %v896_v49 = vld [vmem:[%s1261_s1 + $0x18] sm:$0xff]   ;;  %v897_v51 = vld [vmem:[%s1261_s1 + $0x20] sm:$0xff]  }
  0x2c   :  { %879 = vmatprep.subr.msk.bf16.mxu0 %vm382_vm0, %v891_v28  ;;  %134 = vperm.xlu0 %883, %v76_v29   ;;  %v101_v50 = vld [vmem:[%s1262_s2 + $0xf8] sm:$0xff]  ;;  %v84_v52 = vld [vmem:[%s1262_s2 + $0x70] sm:$0xff]  ;;  %v665_v54 = vld [vmem:[%s1264_s4] sm:$0x7] }
  0x2d   :  { %139 = vperm.xlu1 %884, %v77_v30   ;;  %v85_v53 = vld [vmem:[%s1262_s2 + $0x78] sm:$0xff]  ;;  %v898_v55 = vld [vmem:[%s1261_s1 + $0x28] sm:$0xff]   ;;  %v899_v56 = vld [vmem:[%s1261_s1 + $0x30] sm:$0xff]  }
  0x2e   :  { %v900_v57 = vld [vmem:[%s1261_s1 + $0x38] sm:$0xff]   ;;  %v901_v58 = vld [vmem:[%s1261_s1 + $0x40] sm:$0xff]   ;;  %v902_v59 = vld [vmem:[%s1261_s1 + $0x48] sm:$0xff]  }
  0x2f   :  { %v903_v60 = vld [vmem:[%s1261_s1 + $0x50] sm:$0xff]   ;;  %v904_v61 = vld [vmem:[%s1261_s1 + $0x58] sm:$0xff]   ;;  %v905_v62 = vld [vmem:[%s1261_s1 + $0x60] sm:$0xff]  }
  0x30   :  { %224 = vperm.xlu0 %883, %v94_v31   ;;  %v906_v63 = vld [vmem:[%s1261_s1 + $0x68] sm:$0xff]   ;;  %v907_v0 = vld [vmem:[%s1261_s1 + $0x70] sm:$0xff]   ;;  %v908_v1 = vld [vmem:[%s1261_s1 + $0x78] sm:$0xff]   ;;  %s934_s1 = smov [#allocation2]  }
  0x31   :  { %229 = vperm.xlu1 %884, %v95_v32   ;;  %v1175_v6 = vld.sshfl [vmem:[%s1263_s3] sm:$0x33 pattern:$0x76325410]  ;;  %s730_s3 = sshll.u32 %s934_s1, 4  ;;  %s731_s3 = int_to_ptr.vmem [resolvable:$true] %s730_s3 }
  0x32   :  { %v679_v7 = vcombine.high %v1175_v6, %v1175_v6  ;;  %s909_s29 = scalar_lea.vmem %s731_s3, 64  ;;  %p914_p1 = scmp.lt.s32.totalorder %s731_s3, %s731_s3 }
  0x33   :  { %838 = vmatpush3.bf16.xpose.msra.mxu0 %v450_v33  ;;  %p910_p0 = scmp.ne.s32.totalorder %s731_s3, %s909_s29  ;;  %p915_p2 = scmp.lt.s32.totalorder %s909_s29, %s909_s29 }
  0x34   :  { %880 = vmatprep.subr.msk.bf16.mxu0 %vm382_vm0, %v892_v34  ;;  %144 = vperm.xlu0 %883, %v78_v35  }
  0x35   :  { %149 = vperm.xlu1 %884, %v79_v36   ;;  %714 = vmatprep.mubr.bf16.mxu1 %v679_v7  ;;  %p916_p3 = por %p915_p2, %p914_p1 }
  0x37   :  { %p917_p4 = pnand %p916_p3, %p910_p0 }
  0x38   :  { %234 = vperm.xlu0 %883, %v96_v37  }
  0x39   :  { %239 = vperm.xlu1 %884, %v97_v38  }
  0x3b   :  { %840 = vmatpush3.bf16.xpose.msra.mxu0 %v453_v39 }
  0x3c   :  { %154 = vperm.xlu0 %883, %v80_v40  }
  0x3d   :  { %159 = vperm.xlu1 %884, %v81_v41  }
  0x40   :  { %244 = vperm.xlu0 %883, %v98_v42  }
  0x41   :  { %249 = vperm.xlu1 %884, %v99_v44  }
  0x42   :  { %842 = vmatmul.mubr.msk.bf16.vlgmr.msra.gmra.mrb[0].mxu0 %vm382_vm0, %v894_v43 }
  0x43   :  { %845 = vmatprep.mubr.msk.bf16.mxu0 %vm382_vm0, %v895_v45 }
  0x44   :  { %164 = vperm.xlu0 %883, %v82_v46  }
  0x45   :  { %169 = vperm.xlu1 %884, %v83_v47  }
  0x48   :  { %254 = vperm.xlu0 %883, %v100_v48  }
  0x49   :  { %259 = vperm.xlu1 %884, %v101_v50  }
  0x4a   :  { %846 = vmatmul.mubr.msk.bf16.gmra.mrb[4].mxu0 %vm382_vm0, %v896_v49 }
  0x4b   :  { %849 = vmatprep.mubr.msk.bf16.mxu0 %vm382_vm0, %v897_v51 }
  0x4c   :  { %174 = vperm.xlu0 %883, %v84_v52  }
  0x4d   :  { %179 = vperm.xlu1 %884, %v85_v53  }
  0x50   :  { %668 = vperm.xlu0 %883, %v665_v54  }
  0x52   :  { %850 = vmatmul.mubr.msk.bf16.gmra.mrb[8].mxu0 %vm382_vm0, %v898_v55 }
  0x53   :  { %853 = vmatprep.mubr.msk.bf16.mxu0 %vm382_vm0, %v899_v56 }
  0x5a   :  { %854 = vmatmul.mubr.msk.bf16.gmra.mrb[12].mxu0 %vm382_vm0, %v900_v57 }
  0x5b   :  { %857 = vmatprep.mubr.msk.bf16.mxu0 %vm382_vm0, %v901_v58 }
  0x62   :  { %858 = vmatmul.mubr.msk.bf16.gmra.mrb[16].mxu0 %vm382_vm0, %v902_v59 }
  0x63   :  { %861 = vmatprep.mubr.msk.bf16.mxu0 %vm382_vm0, %v903_v60 }
  0x6a   :  { %862 = vmatmul.mubr.msk.bf16.gmra.mrb[20].mxu0 %vm382_vm0, %v904_v61 }
  0x6b   :  { %865 = vmatprep.mubr.msk.bf16.mxu0 %vm382_vm0, %v905_v62 }
  0x72   :  { %866 = vmatmul.mubr.msk.bf16.gmra.mrb[24].mxu0 %vm382_vm0, %v906_v63 }
  0x73   :  { %869 = vmatprep.mubr.msk.bf16.mxu0 %vm382_vm0, %v907_v0 }
  0x7a   :  { %870 = vmatmul.mubr.msk.bf16.gmra.mrb[28].mxu0 %vm382_vm0, %v908_v1 }
  0x83   :  { %v1168_v2 = vpop.permute.xlu0 %184 }
  0x84   :  { %v105_v3 = vpop.permute.xlu1 %104 }
  0x87   :  { %v1170_v4 = vpop.permute.xlu0 %189 }
  0x88   :  { %v110_v5 = vpop.permute.xlu1 %109 }
  0x8b   :  { %v1179_v8 = vpop.permute.xlu0 %194 }
  0x8c   :  { %v1181_v9 = vpop.permute.xlu1 %199 }
  0x8f   :  { %v115_v10 = vpop.permute.xlu0 %114 }
  0x90   :  { %v120_v11 = vpop.permute.xlu1 %119 }
  0x93   :  { %v1183_v12 = vpop.permute.xlu0 %204 }
  0x94   :  { %v1185_v13 = vpop.permute.xlu1 %209 }
  0xa3   :  { %v125_v14 = vpop.permute.xlu0 %124 }
  0xa4   :  { %v130_v15 = vpop.permute.xlu1 %129 }
  0xa7   :  { %v1187_v16 = vpop.permute.xlu0 %214 }
  0xa8   :  { %v1189_v17 = vpop.permute.xlu1 %219 }
  0xab   :  { %v135_v18 = vpop.permute.xlu0 %134 }
  0xac   :  { %v140_v19 = vpop.permute.xlu1 %139 }
  0xaf   :  { %v1191_v20 = vpop.permute.xlu0 %224 }
  0xb0   :  { %v1193_v21 = vpop.permute.xlu1 %229 }
  0xb3   :  { %v145_v22 = vpop.permute.xlu0 %144 }
  0xb4   :  { %v150_v23 = vpop.permute.xlu1 %149 }
  0xb7   :  { %v1195_v24 = vpop.permute.xlu0 %234 }
  0xb8   :  { %v1197_v25 = vpop.permute.xlu1 %239 }
  0xbb   :  { %v155_v26 = vpop.permute.xlu0 %154 }
  0xbc   :  { %v160_v30 = vpop.permute.xlu1 %159 }
  0xbf   :  { %v1199_v38 = vpop.permute.xlu0 %244 }
  0xc0   :  { %v1203_v42 = vpop.permute.xlu1 %249 }
  0xc3   :  { %v165_v51 = vpop.permute.xlu0 %164 }
  0xc4   :  { %v170_v55 = vpop.permute.xlu1 %169 }
  0xc7   :  { %v1211_v63 = vpop.permute.xlu0 %254 }
  0xc8   :  { %v1213_v7 = vpop.permute.xlu1 %259 }
 0x115   :  { %v843_v27 = vpop.f32.mrb[0].mxu0 }
 0x116   :  { %v498_v28 = vadd.f32 %v843_v27, %v115_v10  ;;  %v489_v29 = vpop.f32.mrb[1].mxu0  ;;  %v175_v27 = vpop.permute.xlu0 %174 }
 0x117   :  { %v490_v31 = vadd.f32 %v489_v29, %v105_v3  ;;  %v844_v32 = vpop.f32.mrb[2].mxu0 }
 0x118   :  { %v501_v33 = vadd.f32 %v844_v32, %v120_v11  ;;  %v492_v34 = vpop.f32.mrb[3].mxu0  ;;  %v618_v36 = vmax.f32 %v498_v28, 0.0  ;;  %v180_v32 = vpop.permute.xlu1 %179 }
 0x119   :  { %v493_v35 = vadd.f32 %v492_v34, %v110_v5  ;;  %v616_v39 = vmax.f32 %v490_v31, 0.0 }
 0x11a   :  { %v619_v37 = vmax.f32 %v501_v33, 0.0 }
 0x11b   :  { %v617_v40 = vmax.f32 %v493_v35, 0.0 }
 0x11c   :  { %v1201_v41 = vpack.c.bf16 %v619_v37, %v618_v36 }
 0x11d   :  { %v847_v43 = vpop.f32.mrb[4].mxu0  ;;  %v1205_v44 = vpack.c.bf16 %v617_v40, %v616_v39 }
 0x11e   :  { %v514_v45 = vadd.f32 %v847_v43, %v135_v18  ;;  %v505_v46 = vpop.f32.mrb[5].mxu0 }
 0x11f   :  { %v506_v47 = vadd.f32 %v505_v46, %v125_v14  ;;  %v848_v48 = vpop.f32.mrb[6].mxu0 }
 0x120   :  { %v517_v49 = vadd.f32 %v848_v48, %v140_v19  ;;  %v508_v50 = vpop.f32.mrb[7].mxu0  ;;  %v622_v53 = vmax.f32 %v514_v45, 0.0 }
 0x121   :  { %v509_v52 = vadd.f32 %v508_v50, %v130_v15  ;;  %v620_v56 = vmax.f32 %v506_v47, 0.0 }
 0x122   :  { %v623_v54 = vmax.f32 %v517_v49, 0.0 }
 0x123   :  { %v621_v57 = vmax.f32 %v509_v52, 0.0 }
 0x124   :  { %v1207_v58 = vpack.c.bf16 %v623_v54, %v622_v53 }
 0x125   :  { %v1209_v59 = vpack.c.bf16 %v621_v57, %v620_v56  ;;  %v851_v60 = vpop.f32.mrb[8].mxu0 }
 0x126   :  { %v530_v61 = vadd.f32 %v851_v60, %v155_v26  ;;  %v521_v62 = vpop.f32.mrb[9].mxu0 }
 0x127   :  { %v522_v0 = vadd.f32 %v521_v62, %v145_v22  ;;  %v852_v1 = vpop.f32.mrb[10].mxu0 }
 0x128   :  { %v533_v3 = vadd.f32 %v852_v1, %v160_v30  ;;  %v524_v5 = vpop.f32.mrb[11].mxu0  ;;  %v626_v11 = vmax.f32 %v530_v61, 0.0 }
 0x129   :  { %v525_v10 = vadd.f32 %v524_v5, %v150_v23  ;;  %v624_v15 = vmax.f32 %v522_v0, 0.0 }
 0x12a   :  { %v627_v14 = vmax.f32 %v533_v3, 0.0 }
 0x12b   :  { %v625_v18 = vmax.f32 %v525_v10, 0.0 }
 0x12c   :  { %v1215_v19 = vpack.c.bf16 %v627_v14, %v626_v11 }
 0x12d   :  { %v1217_v28 = vpack.c.bf16 %v625_v18, %v624_v15  ;;  %v855_v26 = vpop.f32.mrb[12].mxu0 }
 0x12e   :  { %v546_v29 = vadd.f32 %v855_v26, %v175_v27  ;;  %v537_v31 = vpop.f32.mrb[13].mxu0 }
 0x12f   :  { %v538_v22 = vadd.f32 %v537_v31, %v165_v51  ;;  %v856_v33 = vpop.f32.mrb[14].mxu0 }
 0x130   :  { %v549_v30 = vadd.f32 %v856_v33, %v180_v32  ;;  %v540_v34 = vpop.f32.mrb[15].mxu0  ;;  %v630_v36 = vmax.f32 %v546_v29, 0.0 }
 0x131   :  { %v541_v35 = vadd.f32 %v540_v34, %v170_v55  ;;  %v628_v37 = vmax.f32 %v538_v22, 0.0 }
 0x132   :  { %v631_v23 = vmax.f32 %v549_v30, 0.0 }
 0x133   :  { %v629_v39 = vmax.f32 %v541_v35, 0.0 }
 0x134   :  { %v1219_v40 = vpack.c.bf16 %v631_v23, %v630_v36 }
 0x135   :  { %v1221_v43 = vpack.c.bf16 %v629_v39, %v628_v37  ;;  %v859_v45 = vpop.f32.mrb[16].mxu0 }
 0x136   :  { %v562_v46 = vadd.f32 %v859_v45, %v1179_v8  ;;  %v553_v47 = vpop.f32.mrb[17].mxu0  ;;  %v669_v45 = vpop.permute.xlu0 %668 }
 0x137   :  { %v554_v48 = vadd.f32 %v553_v47, %v1168_v2  ;;  %v860_v49 = vpop.f32.mrb[18].mxu0 }
 0x138   :  { %v565_v50 = vadd.f32 %v860_v49, %v1181_v9  ;;  %v556_v51 = vpop.f32.mrb[19].mxu0  ;;  %v634_v53 = vmax.f32 %v562_v46, 0.0 }
 0x139   :  { %v557_v52 = vadd.f32 %v556_v51, %v1170_v4  ;;  %v632_v55 = vmax.f32 %v554_v48, 0.0 }
 0x13a   :  { %v635_v54 = vmax.f32 %v565_v50, 0.0 }
 0x13b   :  { %v633_v56 = vmax.f32 %v557_v52, 0.0 }
 0x13c   :  { %v658_v57 = vpack.c.bf16 %v635_v54, %v634_v53 }
 0x13d   :  { %v863_v60 = vpop.f32.mrb[20].mxu0  ;;  %v657_v61 = vpack.c.bf16 %v633_v56, %v632_v55 }
 0x13e   :  { %v578_v62 = vadd.f32 %v863_v60, %v1187_v16  ;;  %v569_v0 = vpop.f32.mrb[21].mxu0 }
 0x13f   :  { %v570_v8 = vadd.f32 %v569_v0, %v1183_v12  ;;  %v864_v1 = vpop.f32.mrb[22].mxu0  ;;  %803 = vmatprep.subr.bf16.mxu1 %v657_v61 }
 0x140   :  { %v581_v2 = vadd.f32 %v864_v1, %v1189_v17  ;;  %v572_v9 = vpop.f32.mrb[23].mxu0  ;;  %804 = vmatpush3.bf16.msra.mxu1 %v1205_v44  ;;  %v638_v3 = vmax.f32 %v578_v62, 0.0 }
 0x141   :  { %v573_v4 = vadd.f32 %v572_v9, %v1185_v13  ;;  %805 = vmatprep.subr.bf16.mxu1 %v658_v57  ;;  %v636_v10 = vmax.f32 %v570_v8, 0.0 }
 0x142   :  { %v639_v5 = vmax.f32 %v581_v2, 0.0 }
 0x143   :  { %v637_v11 = vmax.f32 %v573_v4, 0.0 }
 0x144   :  { %v660_v14 = vpack.c.bf16 %v639_v5, %v638_v3  ;;  %806 = vmatpush3.bf16.msra.mxu1 %v1201_v41 }
 0x145   :  { %v659_v16 = vpack.c.bf16 %v637_v11, %v636_v10  ;;  %v867_v15 = vpop.f32.mrb[24].mxu0 }
 0x146   :  { %v594_v12 = vadd.f32 %v867_v15, %v1195_v24  ;;  %v585_v18 = vpop.f32.mrb[25].mxu0 }
 0x147   :  { %v586_v17 = vadd.f32 %v585_v18, %v1191_v20  ;;  %v868_v27 = vpop.f32.mrb[26].mxu0  ;;  %807 = vmatprep.subr.bf16.mxu1 %v659_v16 }
 0x148   :  { %v597_v44 = vadd.f32 %v868_v27, %v1197_v25  ;;  %v588_v13 = vpop.f32.mrb[27].mxu0  ;;  %808 = vmatpush3.bf16.msra.mxu1 %v1209_v59  ;;  %v642_v29 = vmax.f32 %v594_v12, 0.0 }
 0x149   :  { %v589_v26 = vadd.f32 %v588_v13, %v1193_v21  ;;  %809 = vmatprep.subr.bf16.mxu1 %v660_v14  ;;  %v640_v41 = vmax.f32 %v586_v17, 0.0 }
 0x14a   :  { %v643_v31 = vmax.f32 %v597_v44, 0.0 }
 0x14b   :  { %v641_v32 = vmax.f32 %v589_v26, 0.0 }
 0x14c   :  { %v662_v22 = vpack.c.bf16 %v643_v31, %v642_v29  ;;  %810 = vmatpush3.bf16.msra.mxu1 %v1207_v58 }
 0x14d   :  { %v661_v24 = vpack.c.bf16 %v641_v32, %v640_v41  ;;  %v871_v33 = vpop.f32.mrb[28].mxu0 }
 0x14e   :  { %v610_v20 = vadd.f32 %v871_v33, %v1211_v63  ;;  %v601_v30 = vpop.f32.mrb[29].mxu0 }
 0x14f   :  { %v602_v25 = vadd.f32 %v601_v30, %v1199_v38  ;;  %v872_v34 = vpop.f32.mrb[30].mxu0  ;;  %811 = vmatprep.subr.bf16.mxu1 %v661_v24 }
 0x150   :  { %v613_v59 = vadd.f32 %v872_v34, %v1213_v7  ;;  %v604_v21 = vpop.f32.mrb[31].mxu0  ;;  %812 = vmatpush3.bf16.msra.mxu1 %v1217_v28  ;;  %v646_v36 = vmax.f32 %v610_v20, 0.0 }
 0x151   :  { %v605_v35 = vadd.f32 %v604_v21, %v1203_v42  ;;  %813 = vmatprep.subr.bf16.mxu1 %v662_v22  ;;  %v644_v58 = vmax.f32 %v602_v25, 0.0 }
 0x152   :  { %v647_v23 = vmax.f32 %v613_v59, 0.0 }
 0x153   :  { %v645_v37 = vmax.f32 %v605_v35, 0.0 }
 0x154   :  { %v664_v39 = vpack.c.bf16 %v647_v23, %v646_v36  ;;  %814 = vmatpush3.bf16.msra.mxu1 %v1215_v19 }
 0x155   :  { %v663_v63 = vpack.c.bf16 %v645_v37, %v644_v58 }
 0x157   :  { %815 = vmatprep.subr.bf16.mxu1 %v663_v63 }
 0x158   :  { %816 = vmatpush3.bf16.msra.mxu1 %v1221_v43 }
 0x159   :  { %817 = vmatprep.subr.bf16.mxu1 %v664_v39 }
 0x15c   :  { %818 = vmatpush3.bf16.msra.mxu1 %v1219_v40 }
 0x15f   :  { %715 = vmatmul.mubr.bf16.vlgmr.msra.gmra.mrb[0].mxu1 %v1175_v6 }
 0x232   :  { %v819_v38 = vpop.f32.mrb[0].mxu1 }
 0x233   :  { %v820_v7 = vpop.f32.mrb[1].mxu1 }
 0x234   :  { %v821_v42 = vadd.f32 %v820_v7, %v819_v38  ;;  %v822_v28 = vpop.f32.mrb[2].mxu1 }
 0x235   :  { %v823_v46 = vpop.f32.mrb[3].mxu1 }
 0x236   :  { %v717_v47 = vadd.f32 %v821_v42, %v669_v45 }
 0x238   :  { %v722_v48 = vmax.f32 %v717_v47, 0.0 }
 0x23a   :  { %723 = vst [vmem:[#allocation2] sm:$0x7] %v722_v48 }
 0x23b   :  { %920 = shalt.err (!%p917_p4)
}
 0x23c   :  { %s921_s7 = scalar_lea.hbm %s1265_s5, 64 }
 0x23d   :  { %p922_p5 = scmp.ne.s32.totalorder %s1265_s5, %s921_s7  ;;  %p925_p6 = scmp.lt.u32.totalorder %s921_s7, %s1265_s5 }
 0x23f   :  { %p927_p7 = pnand %p925_p6, %p922_p5 }
 0x241   :  { %930 = shalt.err (!%p927_p7)
}
 0x242   :  { %733 = dma.vmem_to_hbm [thread:$0]  %s731_s3, 64, %s1265_s5, [#allocation3]  }
 0x243   :  { %931 = dma.done.wait [#allocation3], 64  }
 0x244   :  { %932 = vsyncadd [#allocation3], 4294967232 }
 0x245   :  { %737 = vsyncpa [#allocation3], 1 }

</bundles_post_ra>
